<compile_context>
chip_gen: v5e
topology: v5e:2x2
jax: 0.10.0
libtpu: 0.0.40
codegen_flags: <defaults>
</compile_context>

<pallas_src>
import functools

import jax
import jax.numpy as jnp
from jax.experimental import pallas as pl
from jax.experimental.pallas import tpu as pltpu

_LANE = 128
_SUBLANE = 8


def _round_up(v, m):
    return (v + m - 1) // m * m


def _mlp_kernel(x_ref, w1_ref, b1_ref, w2_ref, b2_ref, o_ref, *,
                n_states, n_actions):
    # ---- fc1 on the VPU ---------------------------------------------------
    # K (= n_states) is a handful of elements; an unrolled
    # broadcast-multiply-accumulate avoids an MXU push/pop round-trip for
    # what is effectively a few FMAs. n_states is static -> fully unrolled.
    x = x_ref[...]                         # (tb, n_states)
    w1 = w1_ref[...]                       # (n_states, h_pad), lane-dense
    acc = x[:, 0:1] * w1[0:1, :]
    for k in range(1, n_states):
        acc = acc + x[:, k:k + 1] * w1[k:k + 1, :]
    h = jnp.maximum(acc + b1_ref[...], 0.0)             # bias + ReLU (f32 VPU)

    # ---- out layer on the MXU ----------------------------------------------
    # (tb, h_pad) @ (h_pad, a_pad): K and N are 128 after padding, so the MXU
    # sees lane-dense operands.
    y = jnp.dot(h, w2_ref[...], preferred_element_type=jnp.float32)
    y = y + b2_ref[...]
    # Narrow store: only the real action columns go back to HBM.
    o_ref[...] = y[:, :n_actions].astype(o_ref.dtype)


def pad_params(w1, b1, w2, b2):
    """Pad params to lane-dense layouts ONCE (at init / target-net sync).

    Weights are stored (in_features, out_features) (transpose of torch layout).
    Zero padding is exact: padded hidden units have zero weight + bias and
    contribute nothing after ReLU; padded action columns are never stored.
    """
    n_states, n_hidden = w1.shape
    n_actions = w2.shape[1]
    dtype = w1.dtype
    h_pad = _round_up(n_hidden, _LANE)
    a_pad = _round_up(n_actions, _LANE)
    w1p = jnp.zeros((n_states, h_pad), dtype).at[:, :n_hidden].set(w1)
    b1p = jnp.zeros((1, h_pad), dtype).at[:, :n_hidden].set(b1.reshape(1, -1))
    w2p = jnp.zeros((h_pad, a_pad), dtype).at[:n_hidden, :n_actions].set(w2)
    b2p = jnp.zeros((1, a_pad), dtype).at[:, :n_actions].set(b2.reshape(1, -1))
    return w1p, b1p, w2p, b2p


@functools.partial(jax.jit, static_argnames=("n_actions", "block_b"))
def net_forward(x, w1p, b1p, w2p, b2p, *, n_actions, block_b=1024):
    """Fused fc1 -> relu -> out for the DQN Net (takes pre-padded params)."""
    B, n_states = x.shape
    h_pad = w1p.shape[1]
    a_pad = w2p.shape[1]
    dtype = x.dtype

    # Batch tile: multiple of 8 (f32 sublane) and large (amortizes per-step
    # overhead on v5e/v6e), but capped at ceil(B/2) so the parallel grid has
    # >= 2 steps and both v7x TensorCores get a share of the batch.
    tb = min(block_b, _round_up(B, _SUBLANE))
    if B > _SUBLANE:
        tb = min(tb, _round_up(pl.cdiv(B, 2), _SUBLANE))
    grid = pl.cdiv(B, tb)   # ragged last block is masked by Pallas

    itemsize = jnp.dtype(dtype).itemsize
    cost = pl.CostEstimate(
        flops=2 * B * (n_states * h_pad + h_pad * a_pad),
        transcendentals=0,
        bytes_accessed=(x.size + w1p.size + b1p.size + w2p.size + b2p.size
                        + B * n_actions) * itemsize,
    )

    kernel = functools.partial(_mlp_kernel, n_states=n_states,
                               n_actions=n_actions)

    return pl.pallas_call(
        kernel,
        out_shape=jax.ShapeDtypeStruct((B, n_actions), dtype),
        grid_spec=pltpu.PrefetchScalarGridSpec(
            num_scalar_prefetch=0,
            grid=(grid,),
            in_specs=[
                pl.BlockSpec((tb, n_states), lambda i: (i, 0)),      # x streams
                pl.BlockSpec((n_states, h_pad), lambda i: (0, 0)),   # w1 resident
                pl.BlockSpec((1, h_pad), lambda i: (0, 0)),          # b1 resident
                pl.BlockSpec((h_pad, a_pad), lambda i: (0, 0)),      # w2 resident
                pl.BlockSpec((1, a_pad), lambda i: (0, 0)),          # b2 resident
            ],
            # Narrow output block; last dim equals the full array dim so the
            # (8,128) rule is satisfied.
            out_specs=pl.BlockSpec((tb, n_actions), lambda i: (i, 0)),
        ),
        compiler_params=pltpu.CompilerParams(
            dimension_semantics=("parallel",),  # shards batch across v7x's 2 TCs
        ),
        cost_estimate=cost,
    )(x, w1p, b1p, w2p, b2p)


def init_params(key, n_states, n_actions, n_hidden, dtype=jnp.float32):
    """Deterministic init mimicking PyTorch nn.Linear default
    (uniform(-1/sqrt(fan_in), 1/sqrt(fan_in)))."""
    k1, k2, k3, k4 = jax.random.split(key, 4)
    bound1 = 1.0 / jnp.sqrt(jnp.asarray(n_states, dtype))
    bound2 = 1.0 / jnp.sqrt(jnp.asarray(n_hidden, dtype))
    # stored as (in_features, out_features) — i.e. transpose of torch's layout
    w1 = jax.random.uniform(k1, (n_states, n_hidden), dtype, -bound1, bound1)
    b1 = jax.random.uniform(k2, (n_hidden,), dtype, -bound1, bound1)
    w2 = jax.random.uniform(k3, (n_hidden, n_actions), dtype, -bound2, bound2)
    b2 = jax.random.uniform(k4, (n_actions,), dtype, -bound2, bound2)
    return w1, b1, w2, b2


if __name__ == "__main__":
    # Small shapes consistent with a DQN: state dim 4 (e.g. CartPole),
    # 2 actions, hidden width 32, batch of 8 transitions.
    B, n_states, n_actions, n_hidden = 8, 4, 2, 32

    key = jax.random.PRNGKey(0)
    kx, kp = jax.random.split(key)
    x = jax.random.normal(kx, (B, n_states), jnp.float32)
    w1, b1, w2, b2 = init_params(kp, n_states, n_actions, n_hidden)

    # Pad once, outside the hot loop (re-run only after a target-net sync).
    w1p, b1p, w2p, b2p = pad_params(w1, b1, w2, b2)

    actions_value = net_forward(x, w1p, b1p, w2p, b2p, n_actions=n_actions)
    jax.block_until_ready(actions_value)

    # Pure-JAX reference check of the same math.
    ref = jnp.maximum(x @ w1 + b1, 0.0) @ w2 + b2
    assert actions_value.shape == (B, n_actions)
    assert jnp.allclose(actions_value, ref, atol=1e-5, rtol=1e-5)

    # Larger batch: exercises a >=2-step parallel grid and a ragged (masked)
    # last block with no explicit batch padding.
    B2 = 1000
    x2 = jax.random.normal(jax.random.PRNGKey(1), (B2, n_states), jnp.float32)
    out2 = net_forward(x2, w1p, b1p, w2p, b2p, n_actions=n_actions)
    jax.block_until_ready(out2)
    ref2 = jnp.maximum(x2 @ w1 + b1, 0.0) @ w2 + b2
    assert out2.shape == (B2, n_actions)
    assert jnp.allclose(out2, ref2, atol=1e-4, rtol=1e-5)

    # Sub-sublane batch (the DQN choose_action path): partial-tile masking.
    B3 = 3
    x3 = jax.random.normal(jax.random.PRNGKey(2), (B3, n_states), jnp.float32)
    out3 = net_forward(x3, w1p, b1p, w2p, b2p, n_actions=n_actions)
    jax.block_until_ready(out3)
    ref3 = jnp.maximum(x3 @ w1 + b1, 0.0) @ w2 + b2
    assert out3.shape == (B3, n_actions)
    assert jnp.allclose(out3, ref3, atol=1e-5, rtol=1e-5)

    print("KERNEL_OK")
</pallas_src>

<mosaic_0001>
module attributes {stable_mosaic.version = 11 : i64} {
  func.func @_mlp_kernel(%arg0: i32, %arg1: memref<8x4xf32, #tpu.memory_space<vmem>>, %arg2: memref<4x128xf32, #tpu.memory_space<vmem>>, %arg3: memref<1x128xf32, #tpu.memory_space<vmem>>, %arg4: memref<128x128xf32, #tpu.memory_space<vmem>>, %arg5: memref<1x128xf32, #tpu.memory_space<vmem>>, %arg6: memref<8x2xf32, #tpu.memory_space<vmem>>) attributes {dimension_semantics = [#tpu.dimension_semantics<parallel>], iteration_bounds = array<i64: 1>, scalar_prefetch = 0 : i64, scratch_operands = 0 : i64, tpu.core_type = #tpu.core_type<tc>, window_params = [{transform_indices = @transform_0, window_bounds = array<i64: 8, 4>}, {pipeline_mode = #tpu.pipeline_mode<synchronous>, transform_indices = @transform_1, window_bounds = array<i64: 4, 128>}, {pipeline_mode = #tpu.pipeline_mode<synchronous>, transform_indices = @transform_2, window_bounds = array<i64: 1, 128>}, {pipeline_mode = #tpu.pipeline_mode<synchronous>, transform_indices = @transform_3, window_bounds = array<i64: 128, 128>}, {pipeline_mode = #tpu.pipeline_mode<synchronous>, transform_indices = @transform_4, window_bounds = array<i64: 1, 128>}, {transform_indices = @transform_5, window_bounds = array<i64: 8, 2>}]} {
    %c0 = arith.constant 0 : index
    %c0_0 = arith.constant 0 : index
    %0 = vector.load %arg1[%c0, %c0_0] : memref<8x4xf32, #tpu.memory_space<vmem>>, vector<8x4xf32>
    %c0_1 = arith.constant 0 : index
    %c0_2 = arith.constant 0 : index
    %1 = vector.load %arg2[%c0_1, %c0_2] : memref<4x128xf32, #tpu.memory_space<vmem>>, vector<4x128xf32>
    %2 = vector.extract_strided_slice %0 {offsets = [0, 0], sizes = [8, 1], strides = [1, 1]} : vector<8x4xf32> to vector<8x1xf32>
    %3 = vector.extract_strided_slice %1 {offsets = [0, 0], sizes = [1, 128], strides = [1, 1]} : vector<4x128xf32> to vector<1x128xf32>
    %4 = vector.broadcast %2 : vector<8x1xf32> to vector<8x128xf32>
    %5 = vector.broadcast %3 : vector<1x128xf32> to vector<8x128xf32>
    %6 = arith.mulf %4, %5 : vector<8x128xf32>
    %7 = vector.extract_strided_slice %0 {offsets = [0, 1], sizes = [8, 1], strides = [1, 1]} : vector<8x4xf32> to vector<8x1xf32>
    %8 = vector.extract_strided_slice %1 {offsets = [1, 0], sizes = [1, 128], strides = [1, 1]} : vector<4x128xf32> to vector<1x128xf32>
    %9 = vector.broadcast %7 : vector<8x1xf32> to vector<8x128xf32>
    %10 = vector.broadcast %8 : vector<1x128xf32> to vector<8x128xf32>
    %11 = arith.mulf %9, %10 : vector<8x128xf32>
    %12 = arith.addf %6, %11 : vector<8x128xf32>
    %13 = vector.extract_strided_slice %0 {offsets = [0, 2], sizes = [8, 1], strides = [1, 1]} : vector<8x4xf32> to vector<8x1xf32>
    %14 = vector.extract_strided_slice %1 {offsets = [2, 0], sizes = [1, 128], strides = [1, 1]} : vector<4x128xf32> to vector<1x128xf32>
    %15 = vector.broadcast %13 : vector<8x1xf32> to vector<8x128xf32>
    %16 = vector.broadcast %14 : vector<1x128xf32> to vector<8x128xf32>
    %17 = arith.mulf %15, %16 : vector<8x128xf32>
    %18 = arith.addf %12, %17 : vector<8x128xf32>
    %19 = vector.extract_strided_slice %0 {offsets = [0, 3], sizes = [8, 1], strides = [1, 1]} : vector<8x4xf32> to vector<8x1xf32>
    %20 = vector.extract_strided_slice %1 {offsets = [3, 0], sizes = [1, 128], strides = [1, 1]} : vector<4x128xf32> to vector<1x128xf32>
    %21 = vector.broadcast %19 : vector<8x1xf32> to vector<8x128xf32>
    %22 = vector.broadcast %20 : vector<1x128xf32> to vector<8x128xf32>
    %23 = arith.mulf %21, %22 : vector<8x128xf32>
    %24 = arith.addf %18, %23 : vector<8x128xf32>
    %c0_3 = arith.constant 0 : index
    %c0_4 = arith.constant 0 : index
    %25 = vector.load %arg3[%c0_3, %c0_4] : memref<1x128xf32, #tpu.memory_space<vmem>>, vector<1x128xf32>
    %26 = vector.broadcast %25 : vector<1x128xf32> to vector<8x128xf32>
    %27 = arith.addf %24, %26 : vector<8x128xf32>
    %cst = arith.constant 0.000000e+00 : f32
    %28 = vector.broadcast %cst : f32 to vector<8x128xf32>
    %29 = arith.maximumf %27, %28 : vector<8x128xf32>
    %c0_5 = arith.constant 0 : index
    %c0_6 = arith.constant 0 : index
    %30 = vector.load %arg4[%c0_5, %c0_6] : memref<128x128xf32, #tpu.memory_space<vmem>>, vector<128x128xf32>
    %cst_7 = arith.constant dense<0.000000e+00> : vector<8x128xf32>
    %31 = tpu.matmul %29, %30, %cst_7 {dimension_numbers = #tpu.dot_dimension_numbers<[1], [0], [0], [1], [0, 0, 1, 1], [], []>} : vector<8x128xf32>, vector<128x128xf32>, vector<8x128xf32> -> vector<8x128xf32>
    %c0_8 = arith.constant 0 : index
    %c0_9 = arith.constant 0 : index
    %32 = vector.load %arg5[%c0_8, %c0_9] : memref<1x128xf32, #tpu.memory_space<vmem>>, vector<1x128xf32>
    %33 = vector.broadcast %32 : vector<1x128xf32> to vector<8x128xf32>
    %34 = arith.addf %31, %33 : vector<8x128xf32>
    %35 = vector.extract_strided_slice %34 {offsets = [0, 0], sizes = [8, 2], strides = [1, 1]} : vector<8x128xf32> to vector<8x2xf32>
    %c0_10 = arith.constant 0 : index
    %c0_11 = arith.constant 0 : index
    %36 = vector.load %arg6[%c0_10, %c0_11] : memref<8x2xf32, #tpu.memory_space<vmem>>, vector<8x2xf32>
    tpu.vector_store %arg6[%c0_10, %c0_11], %35 {strides = array<i32>} : memref<8x2xf32, #tpu.memory_space<vmem>>, vector<8x2xf32>,
    return
  }
  func.func @transform_0(%arg0: i32) -> (i32, i32) {
    %c0_i32 = arith.constant 0 : i32
    %c0_i32_0 = arith.constant 0 : i32
    return %arg0, %c0_i32 : i32, i32
  }
  func.func @transform_1(%arg0: i32) -> (i32, i32) {
    %c0_i32 = arith.constant 0 : i32
    %c0_i32_0 = arith.constant 0 : i32
    %c0_i32_1 = arith.constant 0 : i32
    return %c0_i32, %c0_i32_0 : i32, i32
  }
  func.func @transform_2(%arg0: i32) -> (i32, i32) {
    %c0_i32 = arith.constant 0 : i32
    %c0_i32_0 = arith.constant 0 : i32
    %c0_i32_1 = arith.constant 0 : i32
    return %c0_i32, %c0_i32_0 : i32, i32
  }
  func.func @transform_3(%arg0: i32) -> (i32, i32) {
    %c0_i32 = arith.constant 0 : i32
    %c0_i32_0 = arith.constant 0 : i32
    %c0_i32_1 = arith.constant 0 : i32
    return %c0_i32, %c0_i32_0 : i32, i32
  }
  func.func @transform_4(%arg0: i32) -> (i32, i32) {
    %c0_i32 = arith.constant 0 : i32
    %c0_i32_0 = arith.constant 0 : i32
    %c0_i32_1 = arith.constant 0 : i32
    return %c0_i32, %c0_i32_0 : i32, i32
  }
  func.func @transform_5(%arg0: i32) -> (i32, i32) {
    %c0_i32 = arith.constant 0 : i32
    %c0_i32_0 = arith.constant 0 : i32
    return %arg0, %c0_i32 : i32, i32
  }
}

</mosaic_0001>

<bundles_post_ra>
// kernel: net_forward.1
= control target key start
LH: loop header
LB: loop body
LE: loop exit
PB: predicated region body
PF: predicated region fallthrough
CT: control target
= control target key end

     0   :  { %10 = vsyncpa [#allocation3], 0  ;;  %s159_s21 = smov [#allocation2]   ;;  %s160_s23 = smov 128   ;;  %s214_s0 = inlined_call_operand.vmem [shape: f32[8,4], index: 0, kind: input, shape index: {}]   ;;  %s215_s1 = inlined_call_operand.vmem [shape: f32[4,128], index: 1, kind: input, shape index: {}]   ;;  %s216_s2 = inlined_call_operand.vmem [shape: f32[1,128], index: 2, kind: input, shape index: {}]   ;;  %s217_s3 = inlined_call_operand.hbm [shape: f32[128,128], index: 3, kind: input, shape index: {}]   ;;  %s218_s4 = inlined_call_operand.vmem [shape: f32[1,128], index: 4, kind: input, shape index: {}]   ;;  %s219_s5 = inlined_call_operand.vmem [shape: f32[8,2], index: 5, kind: output, shape index: {}]  }
   0x1   :  { %s21_s20 = sshll.u32 %s217_s3, 4  ;;  %s23_s22 = sshll.u32 %s159_s21, 4  ;;  %s22_s20 = int_to_ptr.hbm [resolvable:$true] %s21_s20  ;;  %s24_s22 = int_to_ptr.vmem [resolvable:$true] %s23_s22 }
   0x2   :  { %s161_s24 = smov 8  }
   0x3   :  { %29 = dma.hbm_to_vmem [thread:$0]  %s22_s20, 2048, %s24_s22, [#allocation3], %s160_s23, %s160_s23, %s161_s24  }
   0x4   :  { %157 = dma.done.wait [#allocation3], 2048  }
   0x5   :  { %158 = vsyncadd [#allocation3], 4294965248  ;;  %v162_v0 = vmov 0   ;;  %v163_v1 = vmov 2   ;;  %v36_v2 = vld [vmem:[%s214_s0] sm:$0xff]  ;;  %v87_v3 = vld [vmem:[#allocation2 + $0x78] sm:$0xff] }
   0x6   :  { %126 = vset.pattern.permute.xlu0 %v162_v0  ;;  %128 = vset.pattern.permute.xlu1 %v163_v1  ;;  %v86_v4 = vld [vmem:[#allocation2 + $0x70] sm:$0xff]  ;;  %v85_v5 = vld [vmem:[#allocation2 + $0x68] sm:$0xff]  ;;  %v84_v6 = vld [vmem:[#allocation2 + $0x60] sm:$0xff]  ;;  %v164_v8 = vmov 1   ;;  %v165_v9 = vmov 3   ;;  %vm112_vm0 = vcmask 15360  }
   0x7   :  { %40 = vperm.xlu0 %126, %v36_v2   ;;  %53 = vperm.xlu1 %128, %v36_v2   ;;  %v83_v7 = vld [vmem:[#allocation2 + $0x58] sm:$0xff]  ;;  %v82_v10 = vld [vmem:[#allocation2 + $0x50] sm:$0xff]  ;;  %v81_v11 = vld [vmem:[#allocation2 + $0x48] sm:$0xff] }
   0x8   :  { %92 = vmatpush.msra.mxu0 %v87_v3  ;;  %v80_v12 = vld [vmem:[#allocation2 + $0x40] sm:$0xff]  ;;  %v79_v13 = vld [vmem:[#allocation2 + $0x38] sm:$0xff]  ;;  %v78_v14 = vld [vmem:[#allocation2 + $0x30] sm:$0xff] }
   0x9   :  { %v77_v15 = vld [vmem:[#allocation2 + $0x28] sm:$0xff]  ;;  %v76_v16 = vld [vmem:[#allocation2 + $0x20] sm:$0xff]  ;;  %v75_v17 = vld [vmem:[#allocation2 + $0x18] sm:$0xff] }
   0xa   :  { %93 = vmatpush.msra.mxu0 %v86_v4  ;;  %v74_v18 = vld [vmem:[#allocation2 + $0x10] sm:$0xff]  ;;  %v73_v19 = vld [vmem:[#allocation2 + $0x8] sm:$0xff]  ;;  %v72_v20 = vld [vmem:[#allocation2] sm:$0xff] }
   0xb   :  { %v37_v23 = vld [vmem:[%s215_s1] sm:$0xf] }
   0xc   :  { %94 = vmatpush.msra.mxu0 %v85_v5  ;;  %v43_v24 = vperm.slane %v37_v23, 0  ;;  %v49_v25 = vperm.slane %v37_v23, 1  ;;  %v56_v26 = vperm.slane %v37_v23, 2  ;;  %v63_v27 = vperm.slane %v37_v23, 3  ;;  %v131_v36 = vld [vmem:[%s216_s2] ss:$0 sm:$0xff] }
   0xd   :  { %v132_v40 = vld [vmem:[%s218_s4] ss:$0 sm:$0xff] }
   0xe   :  { %95 = vmatpush.msra.mxu0 %v84_v6 }
   0xf   :  { %127 = vset.pattern.permute.xlu0 %v164_v8  ;;  %129 = vset.pattern.permute.xlu1 %v165_v9 }
  0x10   :  { %46 = vperm.xlu0 %127, %v36_v2   ;;  %60 = vperm.xlu1 %129, %v36_v2  }
  0x11   :  { %96 = vmatpush.msra.mxu0 %v83_v7 }
  0x13   :  { %97 = vmatpush.msra.mxu0 %v82_v10 }
  0x15   :  { %98 = vmatpush.msra.mxu0 %v81_v11 }
  0x17   :  { %99 = vmatpush.msra.mxu0 %v80_v12 }
  0x18   :  { %130 = vset.pattern.permute.xlu0 %v165_v9 }
  0x19   :  { %100 = vmatpush.msra.mxu0 %v79_v13 }
  0x1b   :  { %101 = vmatpush.msra.mxu0 %v78_v14 }
  0x1d   :  { %102 = vmatpush.msra.mxu0 %v77_v15 }
  0x1f   :  { %103 = vmatpush.msra.mxu0 %v76_v16 }
  0x21   :  { %104 = vmatpush.msra.mxu0 %v75_v17 }
  0x23   :  { %105 = vmatpush.msra.mxu0 %v74_v18 }
  0x25   :  { %106 = vmatpush.msra.mxu0 %v73_v19 }
  0x27   :  { %107 = vmatpush.msra.mxu0 %v72_v20 }
  0x79   :  { %v41_v21 = vpop.permute.xlu0 %40  ;;  %v54_v22 = vpop.permute.xlu1 %53 }
  0x7a   :  { %v44_v30 = vmul.f32 %v43_v24, %v41_v21  ;;  %v57_v32 = vmul.f32 %v56_v26, %v54_v22 }
  0x82   :  { %v47_v28 = vpop.permute.xlu0 %46  ;;  %v61_v29 = vpop.permute.xlu1 %60 }
  0x83   :  { %v50_v31 = vmul.f32 %v49_v25, %v47_v28  ;;  %v64_v34 = vmul.f32 %v63_v27, %v61_v29 }
  0x85   :  { %v51_v33 = vadd.f32 %v50_v31, %v44_v30 }
  0x87   :  { %v58_v35 = vadd.f32 %v57_v32, %v51_v33 }
  0x89   :  { %v65_v37 = vadd.f32 %v64_v34, %v58_v35 }
  0x8b   :  { %v70_v38 = vadd.f32 %v131_v36, %v65_v37 }
  0x8d   :  { %v71_v39 = vmax.f32 %v70_v38, 0.0 }
  0x8f   :  { %108 = vmatmul.f32.vlgmr.msra.gmra.mxu0 %v71_v39 }
 0x10c   :  { %v109_v41 = vpop.f32.mrf.mxu0 }
 0x10d   :  { %v110_v42 = vadd.f32 %v132_v40, %v109_v41 }
 0x10f   :  { %113 = vst.msk [vmem:[%s219_s5] sm:$0xff] %vm112_vm0, %v110_v42 }
 0x110   :  { %118 = vsyncpa [#allocation3], 1 }

</bundles_post_ra>
